<compile_context>
chip_gen: v6e
topology: v6e:2x2x1
jax: 0.10.0
libtpu: 0.0.40
codegen_flags: <defaults>
</compile_context>

<pallas_src>
import numpy as np
import jax
import jax.numpy as jnp
from jax.experimental import pallas as pl
from jax.experimental.pallas import tpu as pltpu


# ----------------------------------------------------------------------------
# tiling helpers
# ----------------------------------------------------------------------------
def _pad8(c: int) -> int:
    return -(-c // 8) * 8


def _round_down_128(v: int) -> int:
    return max(128, (v // 128) * 128)


def _pick_tile_m(m: int, cin: int, cout: int, n: int,
                 *, block_budget_bytes: int = 24 * 1024 * 1024) -> int:
    """Spatial (lane-dim) tile size.

    Sized from the real double-buffered block footprint
        2 * (pad8(Cin) + pad8(Cout)) * TM * 4 bytes
    kept a multiple of 128 (lane-dense).  Never returns an oversized
    full-extent ragged block; ragged tails are handled by pl.cdiv + masking.
    """
    if m < 128:
        return m  # tiny map: single full-extent block (legal: equals full dim)
    bytes_per_elem = 2 * (_pad8(cin) + _pad8(cout)) * 4
    tm = _round_down_128(block_budget_bytes // bytes_per_elem)
    # Cap at the array extent (multiple-of-128 portion if ragged).
    cap = m if m % 128 == 0 else _round_down_128(m)
    tm = min(tm, cap)
    # v7x has 2 TensorCores: with a single image, split the spatial axis into
    # >= 2 parallel tiles so one core doesn't idle.  No effect on v5e/v6e.
    if n == 1:
        while pl.cdiv(m, tm) < 2 and tm > 128:
            tm = _round_down_128(tm // 2)
    return tm


# ----------------------------------------------------------------------------
# Pallas kernel: 1x1 conv (no bias), channels-first
# ----------------------------------------------------------------------------
def _head_kernel(x_ref, w_ref, o_ref):
    # x: (1, Cin, TM), w: (Cout, Cin) -> o: (1, Cout, TM).  H*W is in lanes.
    o_ref[0] = jnp.dot(
        w_ref[...], x_ref[0], preferred_element_type=jnp.float32
    ).astype(o_ref.dtype)
    # TODO(synk): if the surrounding model applies an elementwise op right
    # after Head (bias / activation / scale), fuse it here before the store:
    # the VPU/EUP slots are idle in this HBM-bound kernel.


def _head_forward_pallas(x_nchw, w, *, stream_bf16: bool = False):
    n, cin, h, wdt = x_nchw.shape
    cout = w.shape[0]
    m = h * wdt

    x3 = x_nchw.reshape(n, cin, m)  # free reshape, no data movement
    if stream_bf16:
        # Purely HBM-bound: halving the read traffic is ~free accuracy-wise
        # because the MXU still accumulates in f32.  Off by default.
        x3 = x3.astype(jnp.bfloat16)
        w = w.astype(jnp.bfloat16)

    tm = _pick_tile_m(m, cin, cout, n)
    grid = (n, pl.cdiv(m, tm))

    # VMEM budget derived from the chosen blocks: double-buffered input and
    # output tiles + resident weight + slack; clamped well under v7x's 64 MiB.
    in_item = jnp.dtype(x3.dtype).itemsize
    block_bytes = 2 * (_pad8(cin) * in_item + _pad8(cout) * 4) * tm
    w_bytes = 2 * _pad8(cout) * 128 * 4
    vmem_limit = int(min(max(block_bytes + w_bytes + (4 << 20), 16 << 20),
                         48 << 20))

    y = pl.pallas_call(
        _head_kernel,
        out_shape=jax.ShapeDtypeStruct((n, cout, m), jnp.float32),
        grid=grid,
        in_specs=[
            pl.BlockSpec((1, cin, tm), lambda i, j: (i, 0, j)),
            pl.BlockSpec((cout, cin), lambda i, j: (0, 0)),
        ],
        out_specs=pl.BlockSpec((1, cout, tm), lambda i, j: (i, 0, j)),
        compiler_params=pltpu.CompilerParams(
            # batch and spatial-tile axes are both independent.
            dimension_semantics=("parallel", "parallel"),
            vmem_limit_bytes=vmem_limit,
        ),
    )(x3, w)
    return y.reshape(n, cout, h, wdt)


def head_forward(x_nchw, w, *, force_pallas: bool = False,
                 stream_bf16: bool = False):
    """Head forward: ReflectionPad2d(0) (no-op) + 1x1 conv, no bias.

    x_nchw: (N, Cin, H, W) float32
    w:      (Cout, Cin)    float32   (PyTorch OIHW weight with the 1x1 squeezed)
    returns (N, Cout, H, W) float32 in NCHW.
    """
    n, cin, h, wdt = x_nchw.shape
    cout = w.shape[0]
    out_bytes = n * cout * h * wdt * 4
    # Tiny feature maps: pallas_call launch + grid-step overhead dwarfs the
    # work; let XLA fuse the 1x1 conv into neighboring ops instead.
    if out_bytes < (1 << 20) and not force_pallas:
        return jnp.einsum("nchw,oc->nohw", x_nchw, w,
                          precision=jax.lax.Precision.HIGHEST)
    return _head_forward_pallas(x_nchw, w, stream_bf16=stream_bf16)


# ----------------------------------------------------------------------------
# pure-JAX reference (same math, no Pallas) for a correctness check
# ----------------------------------------------------------------------------
def ref_forward(x_nchw, w):
    return jnp.einsum("nchw,oc->nohw", x_nchw, w,
                      precision=jax.lax.Precision.HIGHEST)


# ----------------------------------------------------------------------------
# deterministic parameter construction + run
# ----------------------------------------------------------------------------
if __name__ == "__main__":
    key = jax.random.PRNGKey(0)
    kw, kx = jax.random.split(key)

    batch = 2
    channel_in = 4
    channel_out = 16
    height = width = 16

    # PyTorch Conv2d(channel_in, channel_out, kernel_size=1, bias=False)
    # weight has shape (Cout, Cin, 1, 1); store it squeezed as (Cout, Cin).
    w = 0.2 * jax.random.normal(kw, (channel_out, channel_in), jnp.float32)

    # NCHW input, matching the PyTorch module.
    x = jax.random.normal(kx, (batch, channel_in, height, width), jnp.float32)

    # Force the Pallas path so the kernel itself compiles, runs, and is checked
    # (the size-based dispatch would otherwise route this toy shape to einsum).
    out = head_forward(x, w, force_pallas=True)
    out = jax.block_until_ready(out)
    assert out.shape == (batch, channel_out, height, width), out.shape

    ref = jax.block_until_ready(ref_forward(x, w))
    if not np.allclose(np.asarray(out), np.asarray(ref), atol=1e-5, rtol=1e-5):
        raise AssertionError("Pallas result does not match pure-JAX reference")

    print("KERNEL_OK")
</pallas_src>

<mosaic_0001>
module attributes {stable_mosaic.version = 11 : i64} {
  func.func @_head_kernel(%arg0: i32, %arg1: i32, %arg2: memref<1x4x256xf32, #tpu.memory_space<vmem>>, %arg3: memref<16x4xf32, #tpu.memory_space<vmem>>, %arg4: memref<1x16x256xf32, #tpu.memory_space<vmem>>) attributes {dimension_semantics = [#tpu.dimension_semantics<parallel>, #tpu.dimension_semantics<parallel>], iteration_bounds = array<i64: 2, 1>, scalar_prefetch = 0 : i64, scratch_operands = 0 : i64, tpu.core_type = #tpu.core_type<tc>, window_params = [{transform_indices = @transform_0, window_bounds = array<i64: 1, 4, 256>}, {pipeline_mode = #tpu.pipeline_mode<synchronous>, transform_indices = @transform_1, window_bounds = array<i64: 16, 4>}, {transform_indices = @transform_2, window_bounds = array<i64: 1, 16, 256>}]} {
    %c0 = arith.constant 0 : index
    %c0_0 = arith.constant 0 : index
    %0 = vector.load %arg3[%c0, %c0_0] : memref<16x4xf32, #tpu.memory_space<vmem>>, vector<16x4xf32>
    %c0_1 = arith.constant 0 : index
    %c0_2 = arith.constant 0 : index
    %c0_3 = arith.constant 0 : index
    %1 = vector.load %arg2[%c0_1, %c0_2, %c0_3] : memref<1x4x256xf32, #tpu.memory_space<vmem>>, vector<1x4x256xf32>
    %2 = vector.shape_cast %1 : vector<1x4x256xf32> to vector<4x256xf32>
    %cst = arith.constant dense<0.000000e+00> : vector<16x256xf32>
    %3 = tpu.matmul %0, %2, %cst {dimension_numbers = #tpu.dot_dimension_numbers<[1], [0], [0], [1], [0, 0, 1, 1], [], []>} : vector<16x4xf32>, vector<4x256xf32>, vector<16x256xf32> -> vector<16x256xf32>
    %c0_4 = arith.constant 0 : index
    %c0_5 = arith.constant 0 : index
    %c0_6 = arith.constant 0 : index
    %4 = vector.load %arg4[%c0_4, %c0_5, %c0_6] : memref<1x16x256xf32, #tpu.memory_space<vmem>>, vector<1x16x256xf32>
    %5 = vector.shape_cast %4 : vector<1x16x256xf32> to vector<16x256xf32>
    %6 = vector.shape_cast %3 : vector<16x256xf32> to vector<1x16x256xf32>
    tpu.vector_store %arg4[%c0_4, %c0_5, %c0_6], %6 {strides = array<i32>} : memref<1x16x256xf32, #tpu.memory_space<vmem>>, vector<1x16x256xf32>,
    return
  }
  func.func @transform_0(%arg0: i32, %arg1: i32) -> (i32, i32, i32) {
    %c0_i32 = arith.constant 0 : i32
    %c0_i32_0 = arith.constant 0 : i32
    return %arg0, %c0_i32, %arg1 : i32, i32, i32
  }
  func.func @transform_1(%arg0: i32, %arg1: i32) -> (i32, i32) {
    %c0_i32 = arith.constant 0 : i32
    %c0_i32_0 = arith.constant 0 : i32
    %c0_i32_1 = arith.constant 0 : i32
    return %c0_i32, %c0_i32_0 : i32, i32
  }
  func.func @transform_2(%arg0: i32, %arg1: i32) -> (i32, i32, i32) {
    %c0_i32 = arith.constant 0 : i32
    %c0_i32_0 = arith.constant 0 : i32
    return %arg0, %c0_i32, %arg1 : i32, i32, i32
  }
}

</mosaic_0001>

<bundles_post_ra>
// kernel: tpu_custom_call.1
= control target key start
LH: loop header
LB: loop body
LE: loop exit
PB: predicated region body
PF: predicated region fallthrough
CT: control target
= control target key end

     0   :  { %7 = vsyncpa [#allocation3], 0  ;;  %s663_s0 = inlined_call_operand.vmem [shape: f32[2,4,256], index: 0, kind: input, shape index: {}]   ;;  %s664_s1 = inlined_call_operand.vmem [shape: f32[16,4], index: 1, kind: input, shape index: {}]   ;;  %s665_s2 = inlined_call_operand.hbm [shape: f32[2,16,256], index: 2, kind: output, shape index: {}]  }
   0x1   :  { %9 = vsyncpa [#allocation3 + $0x1], 0  ;;  %s543_s9 = smov 0   ;;  %s545_s10 = smov 0  }
   0x2   :  { %s547_s11 = smov 0   ;;  %s549_s12 = smov 0  }
   0x3   :  { %s551_s13 = smov 0   ;;  %s553_s14 = smov 0  }
   0x4 LB: > { %s366_s15 = sadd.s32 4294967295, %s522_s14   ;;  %s367_s16 = sadd.s32 4294967294, %s522_s14   ;;  %s522_s14 = sphi %s553_s14, %s15_s14   ;;  %s518_s13 = sphi %s551_s13, %s672_s13   ;;  %s514_s12 = sphi %s549_s12, %s671_s12   ;;  %s510_s11 = sphi %s547_s11, %s670_s11   ;;  %s506_s10 = sphi %s545_s10, %s669_s10   ;;  %s502_s9 = sphi %s543_s9, %s668_s9  }
   0x5   : > { %s27_s17 = sadd.s32 1, %s518_s13  ;;  %s85_s18 = sadd.s32 1, %s510_s11 }
   0x6   : > { %p29_p0 = scmp.ge.s32.totalorder %s27_s17, 2  ;;  %p95_p1 = scmp.ne.s32.totalorder %s510_s11, %s506_s10 }
   0x7   : > { %p96_p2 = scmp.eq.s32.totalorder %s366_s15, 1  ;;  %p101_p3 = scmp.ne.s32.totalorder %s506_s10, %s502_s9 }
   0x8   : > { %s674_s17 = smov (%p29_p0, %s27_s17), 0  ;;  %p102_p5 = scmp.eq.s32.totalorder %s367_s16, 1 }
   0x9   : > { %p583_p4 = por %p96_p2, %p95_p1  ;;  %s80_s20 = ssub.s32 %s518_s13, %s674_s17 }
   0xa   : > { %p370_p6 = scmp.ge.s32.totalorder %s522_s14, 1  ;;  %p83_p7 = scmp.eq.s32.totalorder %s80_s20, 0 }
   0xb   : > { %p590_p8 = por %p102_p5, %p101_p3  ;;  %p136_p9 = scmp.lt.s32.totalorder %s522_s14, 3 }
   0xc   : > { %s596_s22 = scalar_select %p83_p7, %s510_s11, %s85_s18  }
   0xd   : > { %p137_p10 = pnand %p370_p6, %p136_p9 }
   0xe   : > { %p163_p11 = scmp.lt.s32.totalorder (!%p137_p10), %s514_s12, 1  ;;  %s159_s4 = sand.u32 (!%p137_p10), 1, %s506_s10  }
   0xf   : > { %140 = sbr.rel (%p137_p10) target bundleno = 238 (0xee), region = 28  ;;  %s371_s5 = sshll.u32 (!%p137_p10), %s159_s4, 5 }
  0x10   : > { %s161_s6 = scalar_lea.vmem (!%p137_p10), [#allocation2], %s371_s5  ;;  %s384_s8 = sshll.u32 (!%p137_p10), %s514_s12, 9 }
  0x11   : > { %s287_s7 = sshll.u32 (!%p137_p10), %s161_s6, 4  ;;  %s616_s18 = scalar_lea.hbm (!%p137_p10), %s665_s2, %s384_s8  ;;  %s611_s7 = int_to_ptr.vmem [resolvable:$true] %s287_s7 }
  0x12   : > { %s618_s20 = scalar_lea.sflag (!%p137_p10), [#allocation3], %s159_s4 }
  0x14   : > { %v524_v0 = vmov 0.0   ;;  %s164_s23 = scalar_select %p163_p11, %s514_s12, 1  ;;  %vm185_vm0 = vcmask 1043456   ;;  %v173_v3 = vld [vmem:[%s664_s1] sm:$0xff]  ;;  %vm178_vm1 = vcmask 31744   ;;  %v174_v4 = vld [vmem:[%s664_s1 + $0x8] sm:$0xff] }
  0x15   : > { %254 = vmatprep.mubr.f32.mxu0 %v524_v0  ;;  %260 = vmatprep.mubr.f32.mxu1 %v524_v0  ;;  %s446_s12 = scalar_lea.vmem %s611_s7, 512 }
  0x16   : > { %s383_s24 = sshll.u32 %s164_s23, 3  ;;  %p447_p12 = scmp.ne.s32.totalorder %s611_s7, %s446_s12 }
  0x17   : > { %s170_s27 = scalar_lea.vmem %s663_s0, %s383_s24  ;;  %s525_s23 = smov [#allocation2]  }
  0x18   : > { %v175_v1 = vld [vmem:[%s170_s27] sm:$0xff]  ;;  %p448_p13 = pnand %p447_p12, %p583_p4  ;;  %s450_s24 = sshll.u32 %s525_s23, 4  ;;  %s451_s24 = int_to_ptr.vmem [resolvable:$false] %s450_s24 }
  0x19   : > { %v177_v2 = vcombine.high %v175_v1, %v175_v1  ;;  %s452_s25 = scalar_lea.vmem %s451_s24, 1024  ;;  %p453_p1 = scmp.lt.s32.totalorder %s611_s7, %s451_s24 }
  0x1a   : > { %p449_p0 = pneg %p448_p13  ;;  %p454_p2 = scmp.lt.s32.totalorder %s452_s25, %s446_s12 }
  0x1b   : > { %374 = vmatprep.subr.msk.mxu0 %vm185_vm0, %v177_v2  ;;  %385 = vmatprep.subr.msk.mxu1 %vm185_vm0, %v177_v2 }
  0x1c   : > { %375 = vmatpush1.msk.msra.mxu0 %vm185_vm0, %v175_v1  ;;  %386 = vmatpush1.msk.msra.mxu1 %vm185_vm0, %v175_v1  ;;  %p455_p3 = por %p454_p2, %p453_p1 }
  0x1d   : > { %376 = vmatmul.mubr.msk.f32.vlgmr.msra.gmra.mxu0 %vm178_vm1, %v173_v3  ;;  %377 = vmatmul.mubr.msk.f32.vlgmr.msra.gmra.mxu1 %vm178_vm1, %v174_v4 }
  0x1e   : > { %p456_p5 = pnand %p455_p3, %p449_p0 }
  0xdd   : > { %v256_v5 = vpop.f32.mrf.mxu0  ;;  %v262_v6 = vpop.f32.mrf.mxu1 }
  0xde   : > { %267 = vst [vmem:[%s161_s6] sm:$0xff] %v256_v5  ;;  %269 = vst [vmem:[%s161_s6 + $0x10] sm:$0xff] %v262_v6 }
  0xdf   : > { %v258_v7 = vpop.f32.mrf.mxu0  ;;  %v264_v8 = vpop.f32.mrf.mxu1 }
  0xe0   : > { %268 = vst [vmem:[%s161_s6 + $0x8] sm:$0xff] %v258_v7  ;;  %270 = vst [vmem:[%s161_s6 + $0x18] sm:$0xff] %v264_v8 }
  0xe1   : > { %459 = shalt.err (!%p456_p5)
}
  0xe2   : > { %s460_s26 = scalar_lea.hbm %s616_s18, 512  ;;  %s464_s29 = scalar_lea.hbm %s665_s2, 1024 }
  0xe3   : > { %p461_p6 = scmp.ne.s32.totalorder %s616_s18, %s460_s26  ;;  %p465_p10 = scmp.lt.s32.totalorder %s616_s18, %s665_s2 }
  0xe4   : > { %p466_p11 = scmp.lt.s32.totalorder %s464_s29, %s460_s26 }
  0xe5   : > { %p462_p7 = pnand %p461_p6, %p583_p4 }
  0xe6   : > { %p467_p12 = por %p466_p11, %p465_p10 }
  0xe7   : > { %p463_p9 = pneg %p462_p7 }
  0xe9   : > { %p468_p13 = pnand %p467_p12, %p463_p9 }
  0xeb   : > { %471 = shalt.err (!%p468_p13)
}
  0xec   : > { %s526_s4 = smov 256   ;;  %s527_s5 = smov 16  }
  0xed   : > { %387 = dma.vmem_to_hbm [thread:$0]  (%p583_p4), %s611_s7, 512, %s616_s18, %s618_s20, %s526_s4, %s526_s4, %s527_s5  }
  0xee PF: > { %p393_p0 = scmp.ge.s32.totalorder %s522_s14, 2  ;;  %s302_s6 = sand.u32 1, %s502_s9  }
  0xef   : > { %s303_s8 = scalar_lea.sflag [#allocation3], %s302_s6 }
  0xf0   : > { %p390_p1 = pnand %p393_p0, %p590_p8 }
  0xf2   : > { %p391_p2 = pneg %p390_p1 }
  0xf4   : > { %497 = dma.done.wait (%p391_p2), %s303_s8, 512  }
  0xf5   : > { %499 = vsyncadd (%p391_p2), %s303_s8, 4294966784  ;;  %s15_s14 = sadd.s32 1, %s522_s14   ;;  %s668_s9 = smov %s506_s10 }
  0xf6   : > { %p12_p3 = scmp.ge.s32.totalorder %s15_s14, 4   ;;  %s669_s10 = smov %s510_s11 }
  0xf7   : > { %s670_s11 = smov %s596_s22  ;;  %s671_s12 = smov %s518_s13 }
  0xf8   : > { %s672_s13 = smov %s674_s17  ;;  %14 = sbr.rel (!%p12_p3) target bundleno = 4 (0x4), region = 63 }
  0xfd   :  { %308 = vsyncpa [#allocation3], 1 }
  0xfe   :  { %310 = vsyncpa [#allocation3 + $0x1], 1 }

</bundles_post_ra>
